<compile_context>
chip_gen: v7x
topology: tpu7x:2x2x1
jax: 0.10.0
libtpu: 0.0.40
codegen_flags: <defaults>
</compile_context>

<pallas_src>
import jax
import jax.numpy as jnp
from jax import lax
from jax.experimental import pallas as pl
from jax.experimental.pallas import tpu as pltpu

LANE = 128


def _round_up(n, m):
    return -(-n // m) * m


# ---------------------------------------------------------------------------
# Fused kernel: conv (im2col matmul) + ReLU + GAP + bottleneck + fc + mlp head
#               + L2 normalize.  One batch-tile (TB images, TB*HW patch rows)
#               per grid step; all weights are grid-invariant VMEM residents.
# ---------------------------------------------------------------------------
def _fused_kernel(patches_ref, pool_ref, wc_ref, bc_ref,
                  wb_ref, bb_ref, wfc_ref, bfc_ref,
                  wh1_ref, bh1_ref, wh2_ref, bh2_ref,
                  preds_ref, outlin_ref, feat_ref):
    # conv3x3 as im2col matmul (bf16 inputs, f32 accumulation) + bias + ReLU
    h = jnp.dot(patches_ref[...], wc_ref[...],
                preferred_element_type=jnp.float32) + bc_ref[...]       # (TB*HW, Dp)
    h = jnp.maximum(h, 0.0)

    # global average pool per image: block-diag pooling matrix (TB, TB*HW) @ h -> (TB, Dp)
    feat = jnp.dot(pool_ref[...], h, preferred_element_type=jnp.float32)
    feat_ref[...] = feat                                                # backbone feats

    # encoder bottleneck -> "preds" fed to fc and head
    p = jnp.dot(feat.astype(wb_ref.dtype), wb_ref[...],
                preferred_element_type=jnp.float32) + bb_ref[...]       # (TB, Dp)

    # self.fc(preds) -> CE logits
    outlin_ref[...] = jnp.dot(p.astype(wfc_ref.dtype), wfc_ref[...],
                              preferred_element_type=jnp.float32) + bfc_ref[...]

    # self.head = Linear -> ReLU -> Linear
    hh = jnp.maximum(jnp.dot(p.astype(wh1_ref.dtype), wh1_ref[...],
                             preferred_element_type=jnp.float32) + bh1_ref[...], 0.0)
    z = jnp.dot(hh.astype(wh2_ref.dtype), wh2_ref[...],
                preferred_element_type=jnp.float32) + bh2_ref[...]      # (TB, Fp)

    # F.normalize(z, dim=1): z / max(||z||, 1e-12)  ==  z * rsqrt(max(||z||^2, 1e-24))
    ssq = jnp.sum(z * z, axis=1, keepdims=True)
    preds_ref[...] = z * lax.rsqrt(jnp.maximum(ssq, 1e-24))


# ---------------------------------------------------------------------------
# Wrapper
# ---------------------------------------------------------------------------
def _im2col_3x3(x_nhwc):
    """(B, H, W, C) -> (B*H*W, 9*C) patches for a 3x3 / pad=1 conv."""
    B, H, W, C = x_nhwc.shape
    xp = jnp.pad(x_nhwc, ((0, 0), (1, 1), (1, 1), (0, 0)))
    cols = [xp[:, dy:dy + H, dx:dx + W, :] for dy in range(3) for dx in range(3)]
    patches = jnp.stack(cols, axis=3)                    # (B, H, W, 9, C)
    return patches.reshape(B * H * W, 9 * C)


def _pad2(a, rows, cols):
    return jnp.pad(a, ((0, rows - a.shape[0]), (0, cols - a.shape[1])))


def supcon_resnet_forward(x_nchw, params):
    x = jnp.transpose(x_nchw, (0, 2, 3, 1))              # NCHW -> NHWC
    B, H, W, C = x.shape
    dim_in = params["wc"].shape[0]                        # conv out channels == features_dim
    num_classes = params["wfc"].shape[0]
    feat_dim = params["wh2"].shape[0]
    HW, K = H * W, 9 * C

    # lane-dense (padded-to-128) feature widths; zero padding keeps math exact
    Dp = _round_up(max(dim_in, LANE), LANE)
    Cp = _round_up(max(num_classes, LANE), LANE)
    Fp = _round_up(max(feat_dim, LANE), LANE)

    # batch tile: largest divisor of B with TB*HW matmul rows <= MAX_ROWS.
    # For small batches this collapses the grid to a single step, making the
    # output blocks equal the full arrays (no partial-sublane stores per step).
    MAX_ROWS = 4096
    TB = 1
    for d in range(1, B + 1):
        if B % d == 0 and d * HW <= MAX_ROWS:
            TB = d
    G = B // TB
    rowblk = TB * HW

    # inputs: im2col patches (bf16 for MXU), per-image mean-pooling matrix (f32)
    patches = _im2col_3x3(x).astype(jnp.bfloat16)         # (B*HW, K)
    pool = (jnp.repeat(jnp.eye(TB, dtype=jnp.float32), HW, axis=1) / HW)  # (TB, TB*HW)

    # PyTorch weights -> kernel layouts: (in, out), zero-padded to lane-dense, bf16
    wc = jnp.transpose(params["wc"], (2, 3, 1, 0)).reshape(K, dim_in)     # (O,I,3,3)->(9I,O)
    wc = _pad2(wc, K, Dp).astype(jnp.bfloat16)
    bc = _pad2(params["bc"].reshape(1, dim_in), 1, Dp)
    wb = _pad2(params["wb"].T, Dp, Dp).astype(jnp.bfloat16)
    bb = _pad2(params["bb"].reshape(1, dim_in), 1, Dp)
    wfc = _pad2(params["wfc"].T, Dp, Cp).astype(jnp.bfloat16)
    bfc = _pad2(params["bfc"].reshape(1, num_classes), 1, Cp)
    wh1 = _pad2(params["wh1"].T, Dp, Dp).astype(jnp.bfloat16)
    bh1 = _pad2(params["bh1"].reshape(1, dim_in), 1, Dp)
    wh2 = _pad2(params["wh2"].T, Dp, Fp).astype(jnp.bfloat16)
    bh2 = _pad2(params["bh2"].reshape(1, feat_dim), 1, Fp)

    const = lambda i: (0, 0)
    preds_p, outlin_p, feat_p = pl.pallas_call(
        _fused_kernel,
        out_shape=(jax.ShapeDtypeStruct((B, Fp), jnp.float32),   # normalized head output
                   jax.ShapeDtypeStruct((B, Cp), jnp.float32),   # fc logits
                   jax.ShapeDtypeStruct((B, Dp), jnp.float32)),  # backbone feats
        grid=(G,),
        in_specs=[
            pl.BlockSpec((rowblk, K), lambda i: (i, 0)),   # patches for this batch tile
            pl.BlockSpec((TB, rowblk), const),             # pooling matrix
            pl.BlockSpec((K, Dp), const), pl.BlockSpec((1, Dp), const),    # conv w, b
            pl.BlockSpec((Dp, Dp), const), pl.BlockSpec((1, Dp), const),   # bottleneck
            pl.BlockSpec((Dp, Cp), const), pl.BlockSpec((1, Cp), const),   # fc
            pl.BlockSpec((Dp, Dp), const), pl.BlockSpec((1, Dp), const),   # head[0]
            pl.BlockSpec((Dp, Fp), const), pl.BlockSpec((1, Fp), const),   # head[2]
        ],
        out_specs=(pl.BlockSpec((TB, Fp), lambda i: (i, 0)),
                   pl.BlockSpec((TB, Cp), lambda i: (i, 0)),
                   pl.BlockSpec((TB, Dp), lambda i: (i, 0))),
        compiler_params=pltpu.CompilerParams(dimension_semantics=("parallel",)),
    )(patches, pool, wc, bc, wb, bb, wfc, bfc, wh1, bh1, wh2, bh2)

    # slice away the zero lane-padding; return order matches the PyTorch module
    return (preds_p[:, :feat_dim], outlin_p[:, :num_classes], feat_p[:, :dim_in])


def init_params(key, c_in=4, dim_in=32, num_classes=10, feat_dim=128):
    ks = jax.random.split(key, 10)
    s = 0.05
    return {
        # synthetic encoder: conv3x3 backbone + bottleneck linear
        "wc":  s * jax.random.normal(ks[0], (dim_in, c_in, 3, 3), jnp.float32),
        "bc":  s * jax.random.normal(ks[1], (dim_in,), jnp.float32),
        "wb":  s * jax.random.normal(ks[2], (dim_in, dim_in), jnp.float32),
        "bb":  s * jax.random.normal(ks[3], (dim_in,), jnp.float32),
        # self.fc = Linear(dim_in, num_classes)
        "wfc": s * jax.random.normal(ks[4], (num_classes, dim_in), jnp.float32),
        "bfc": s * jax.random.normal(ks[5], (num_classes,), jnp.float32),
        # self.head = Linear(dim_in, dim_in), ReLU, Linear(dim_in, feat_dim)
        "wh1": s * jax.random.normal(ks[6], (dim_in, dim_in), jnp.float32),
        "bh1": s * jax.random.normal(ks[7], (dim_in,), jnp.float32),
        "wh2": s * jax.random.normal(ks[8], (feat_dim, dim_in), jnp.float32),
        "bh2": s * jax.random.normal(ks[9], (feat_dim,), jnp.float32),
    }


if __name__ == "__main__":
    key = jax.random.PRNGKey(0)
    kx, kp = jax.random.split(key)
    # small shapes: batch=2, channels=4, spatial=16, features_dim=32
    x = jax.random.normal(kx, (2, 4, 16, 16), jnp.float32)     # NCHW, like PyTorch
    params = init_params(kp, c_in=4, dim_in=32, num_classes=10, feat_dim=128)

    preds, out_lin, feat = jax.jit(supcon_resnet_forward)(x, params)
    jax.block_until_ready((preds, out_lin, feat))

    assert preds.shape == (2, 128)
    assert out_lin.shape == (2, 10)
    assert feat.shape == (2, 32)
    print("KERNEL_OK")
</pallas_src>

<mosaic_0001>
module attributes {stable_mosaic.version = 11 : i64} {
  func.func @_fused_kernel(%arg0: i32, %arg1: memref<512x36xbf16, #tpu.memory_space<vmem>>, %arg2: memref<2x512xf32, #tpu.memory_space<vmem>>, %arg3: memref<36x128xbf16, #tpu.memory_space<vmem>>, %arg4: memref<1x128xf32, #tpu.memory_space<vmem>>, %arg5: memref<128x128xbf16, #tpu.memory_space<vmem>>, %arg6: memref<1x128xf32, #tpu.memory_space<vmem>>, %arg7: memref<128x128xbf16, #tpu.memory_space<vmem>>, %arg8: memref<1x128xf32, #tpu.memory_space<vmem>>, %arg9: memref<128x128xbf16, #tpu.memory_space<vmem>>, %arg10: memref<1x128xf32, #tpu.memory_space<vmem>>, %arg11: memref<128x128xbf16, #tpu.memory_space<vmem>>, %arg12: memref<1x128xf32, #tpu.memory_space<vmem>>, %arg13: memref<2x128xf32, #tpu.memory_space<vmem>>, %arg14: memref<2x128xf32, #tpu.memory_space<vmem>>, %arg15: memref<2x128xf32, #tpu.memory_space<vmem>>) attributes {dimension_semantics = [#tpu.dimension_semantics<parallel>], iteration_bounds = array<i64: 1>, scalar_prefetch = 0 : i64, scratch_operands = 0 : i64, tpu.core_type = #tpu.core_type<tc>, window_params = [{transform_indices = @transform_0, window_bounds = array<i64: 512, 36>}, {pipeline_mode = #tpu.pipeline_mode<synchronous>, transform_indices = @transform_1, window_bounds = array<i64: 2, 512>}, {pipeline_mode = #tpu.pipeline_mode<synchronous>, transform_indices = @transform_2, window_bounds = array<i64: 36, 128>}, {pipeline_mode = #tpu.pipeline_mode<synchronous>, transform_indices = @transform_3, window_bounds = array<i64: 1, 128>}, {pipeline_mode = #tpu.pipeline_mode<synchronous>, transform_indices = @transform_4, window_bounds = array<i64: 128, 128>}, {pipeline_mode = #tpu.pipeline_mode<synchronous>, transform_indices = @transform_5, window_bounds = array<i64: 1, 128>}, {pipeline_mode = #tpu.pipeline_mode<synchronous>, transform_indices = @transform_6, window_bounds = array<i64: 128, 128>}, {pipeline_mode = #tpu.pipeline_mode<synchronous>, transform_indices = @transform_7, window_bounds = array<i64: 1, 128>}, {pipeline_mode = #tpu.pipeline_mode<synchronous>, transform_indices = @transform_8, window_bounds = array<i64: 128, 128>}, {pipeline_mode = #tpu.pipeline_mode<synchronous>, transform_indices = @transform_9, window_bounds = array<i64: 1, 128>}, {pipeline_mode = #tpu.pipeline_mode<synchronous>, transform_indices = @transform_10, window_bounds = array<i64: 128, 128>}, {pipeline_mode = #tpu.pipeline_mode<synchronous>, transform_indices = @transform_11, window_bounds = array<i64: 1, 128>}, {transform_indices = @transform_12, window_bounds = array<i64: 2, 128>}, {transform_indices = @transform_13, window_bounds = array<i64: 2, 128>}, {transform_indices = @transform_14, window_bounds = array<i64: 2, 128>}]} {
    %c0 = arith.constant 0 : index
    %c0_0 = arith.constant 0 : index
    %0 = vector.load %arg1[%c0, %c0_0] : memref<512x36xbf16, #tpu.memory_space<vmem>>, vector<512x36xbf16>
    %c0_1 = arith.constant 0 : index
    %c0_2 = arith.constant 0 : index
    %1 = vector.load %arg3[%c0_1, %c0_2] : memref<36x128xbf16, #tpu.memory_space<vmem>>, vector<36x128xbf16>
    %cst = arith.constant dense<0.000000e+00> : vector<512x128xf32>
    %2 = tpu.matmul %0, %1, %cst {dimension_numbers = #tpu.dot_dimension_numbers<[1], [0], [0], [1], [0, 0, 1, 1], [], []>} : vector<512x36xbf16>, vector<36x128xbf16>, vector<512x128xf32> -> vector<512x128xf32>
    %c0_3 = arith.constant 0 : index
    %c0_4 = arith.constant 0 : index
    %3 = vector.load %arg4[%c0_3, %c0_4] : memref<1x128xf32, #tpu.memory_space<vmem>>, vector<1x128xf32>
    %4 = vector.broadcast %3 : vector<1x128xf32> to vector<512x128xf32>
    %5 = arith.addf %2, %4 : vector<512x128xf32>
    %cst_5 = arith.constant 0.000000e+00 : f32
    %6 = vector.broadcast %cst_5 : f32 to vector<512x128xf32>
    %7 = arith.maximumf %5, %6 : vector<512x128xf32>
    %c0_6 = arith.constant 0 : index
    %c0_7 = arith.constant 0 : index
    %8 = vector.load %arg2[%c0_6, %c0_7] : memref<2x512xf32, #tpu.memory_space<vmem>>, vector<2x512xf32>
    %cst_8 = arith.constant dense<0.000000e+00> : vector<2x128xf32>
    %9 = tpu.matmul %8, %7, %cst_8 {dimension_numbers = #tpu.dot_dimension_numbers<[1], [0], [0], [1], [0, 0, 1, 1], [], []>} : vector<2x512xf32>, vector<512x128xf32>, vector<2x128xf32> -> vector<2x128xf32>
    %c0_9 = arith.constant 0 : index
    %c0_10 = arith.constant 0 : index
    %10 = vector.load %arg15[%c0_9, %c0_10] : memref<2x128xf32, #tpu.memory_space<vmem>>, vector<2x128xf32>
    tpu.vector_store %arg15[%c0_9, %c0_10], %9 {strides = array<i32>} : memref<2x128xf32, #tpu.memory_space<vmem>>, vector<2x128xf32>,
    %11 = arith.truncf %9 : vector<2x128xf32> to vector<2x128xbf16>
    %c0_11 = arith.constant 0 : index
    %c0_12 = arith.constant 0 : index
    %12 = vector.load %arg5[%c0_11, %c0_12] : memref<128x128xbf16, #tpu.memory_space<vmem>>, vector<128x128xbf16>
    %cst_13 = arith.constant dense<0.000000e+00> : vector<2x128xf32>
    %13 = tpu.matmul %11, %12, %cst_13 {dimension_numbers = #tpu.dot_dimension_numbers<[1], [0], [0], [1], [0, 0, 1, 1], [], []>} : vector<2x128xbf16>, vector<128x128xbf16>, vector<2x128xf32> -> vector<2x128xf32>
    %c0_14 = arith.constant 0 : index
    %c0_15 = arith.constant 0 : index
    %14 = vector.load %arg6[%c0_14, %c0_15] : memref<1x128xf32, #tpu.memory_space<vmem>>, vector<1x128xf32>
    %15 = vector.broadcast %14 : vector<1x128xf32> to vector<2x128xf32>
    %16 = arith.addf %13, %15 : vector<2x128xf32>
    %17 = arith.truncf %16 : vector<2x128xf32> to vector<2x128xbf16>
    %c0_16 = arith.constant 0 : index
    %c0_17 = arith.constant 0 : index
    %18 = vector.load %arg7[%c0_16, %c0_17] : memref<128x128xbf16, #tpu.memory_space<vmem>>, vector<128x128xbf16>
    %cst_18 = arith.constant dense<0.000000e+00> : vector<2x128xf32>
    %19 = tpu.matmul %17, %18, %cst_18 {dimension_numbers = #tpu.dot_dimension_numbers<[1], [0], [0], [1], [0, 0, 1, 1], [], []>} : vector<2x128xbf16>, vector<128x128xbf16>, vector<2x128xf32> -> vector<2x128xf32>
    %c0_19 = arith.constant 0 : index
    %c0_20 = arith.constant 0 : index
    %20 = vector.load %arg8[%c0_19, %c0_20] : memref<1x128xf32, #tpu.memory_space<vmem>>, vector<1x128xf32>
    %21 = vector.broadcast %20 : vector<1x128xf32> to vector<2x128xf32>
    %22 = arith.addf %19, %21 : vector<2x128xf32>
    %c0_21 = arith.constant 0 : index
    %c0_22 = arith.constant 0 : index
    %23 = vector.load %arg14[%c0_21, %c0_22] : memref<2x128xf32, #tpu.memory_space<vmem>>, vector<2x128xf32>
    tpu.vector_store %arg14[%c0_21, %c0_22], %22 {strides = array<i32>} : memref<2x128xf32, #tpu.memory_space<vmem>>, vector<2x128xf32>,
    %24 = arith.truncf %16 : vector<2x128xf32> to vector<2x128xbf16>
    %c0_23 = arith.constant 0 : index
    %c0_24 = arith.constant 0 : index
    %25 = vector.load %arg9[%c0_23, %c0_24] : memref<128x128xbf16, #tpu.memory_space<vmem>>, vector<128x128xbf16>
    %cst_25 = arith.constant dense<0.000000e+00> : vector<2x128xf32>
    %26 = tpu.matmul %24, %25, %cst_25 {dimension_numbers = #tpu.dot_dimension_numbers<[1], [0], [0], [1], [0, 0, 1, 1], [], []>} : vector<2x128xbf16>, vector<128x128xbf16>, vector<2x128xf32> -> vector<2x128xf32>
    %c0_26 = arith.constant 0 : index
    %c0_27 = arith.constant 0 : index
    %27 = vector.load %arg10[%c0_26, %c0_27] : memref<1x128xf32, #tpu.memory_space<vmem>>, vector<1x128xf32>
    %28 = vector.broadcast %27 : vector<1x128xf32> to vector<2x128xf32>
    %29 = arith.addf %26, %28 : vector<2x128xf32>
    %cst_28 = arith.constant 0.000000e+00 : f32
    %30 = vector.broadcast %cst_28 : f32 to vector<2x128xf32>
    %31 = arith.maximumf %29, %30 : vector<2x128xf32>
    %32 = arith.truncf %31 : vector<2x128xf32> to vector<2x128xbf16>
    %c0_29 = arith.constant 0 : index
    %c0_30 = arith.constant 0 : index
    %33 = vector.load %arg11[%c0_29, %c0_30] : memref<128x128xbf16, #tpu.memory_space<vmem>>, vector<128x128xbf16>
    %cst_31 = arith.constant dense<0.000000e+00> : vector<2x128xf32>
    %34 = tpu.matmul %32, %33, %cst_31 {dimension_numbers = #tpu.dot_dimension_numbers<[1], [0], [0], [1], [0, 0, 1, 1], [], []>} : vector<2x128xbf16>, vector<128x128xbf16>, vector<2x128xf32> -> vector<2x128xf32>
    %c0_32 = arith.constant 0 : index
    %c0_33 = arith.constant 0 : index
    %35 = vector.load %arg12[%c0_32, %c0_33] : memref<1x128xf32, #tpu.memory_space<vmem>>, vector<1x128xf32>
    %36 = vector.broadcast %35 : vector<1x128xf32> to vector<2x128xf32>
    %37 = arith.addf %34, %36 : vector<2x128xf32>
    %38 = arith.mulf %37, %37 : vector<2x128xf32>
    %cst_34 = arith.constant dense<0.000000e+00> : vector<2xf32>
    %39 = vector.multi_reduction <add>, %38, %cst_34 [1] : vector<2x128xf32> to vector<2xf32>
    %40 = vector.shape_cast %39 : vector<2xf32> to vector<2x1xf32>
    %cst_35 = arith.constant 1.000000e-24 : f32
    %41 = vector.broadcast %cst_35 : f32 to vector<2x1xf32>
    %42 = arith.maximumf %40, %41 : vector<2x1xf32>
    %43 = math.rsqrt %42 : vector<2x1xf32>
    %44 = vector.broadcast %43 : vector<2x1xf32> to vector<2x128xf32>
    %45 = arith.mulf %37, %44 : vector<2x128xf32>
    %c0_36 = arith.constant 0 : index
    %c0_37 = arith.constant 0 : index
    %46 = vector.load %arg13[%c0_36, %c0_37] : memref<2x128xf32, #tpu.memory_space<vmem>>, vector<2x128xf32>
    tpu.vector_store %arg13[%c0_36, %c0_37], %45 {strides = array<i32>} : memref<2x128xf32, #tpu.memory_space<vmem>>, vector<2x128xf32>,
    return
  }
  func.func @transform_0(%arg0: i32) -> (i32, i32) {
    %c0_i32 = arith.constant 0 : i32
    %c0_i32_0 = arith.constant 0 : i32
    return %arg0, %c0_i32 : i32, i32
  }
  func.func @transform_1(%arg0: i32) -> (i32, i32) {
    %c0_i32 = arith.constant 0 : i32
    %c0_i32_0 = arith.constant 0 : i32
    %c0_i32_1 = arith.constant 0 : i32
    return %c0_i32, %c0_i32_0 : i32, i32
  }
  func.func @transform_2(%arg0: i32) -> (i32, i32) {
    %c0_i32 = arith.constant 0 : i32
    %c0_i32_0 = arith.constant 0 : i32
    %c0_i32_1 = arith.constant 0 : i32
    return %c0_i32, %c0_i32_0 : i32, i32
  }
  func.func @transform_3(%arg0: i32) -> (i32, i32) {
    %c0_i32 = arith.constant 0 : i32
    %c0_i32_0 = arith.constant 0 : i32
    %c0_i32_1 = arith.constant 0 : i32
    return %c0_i32, %c0_i32_0 : i32, i32
  }
  func.func @transform_4(%arg0: i32) -> (i32, i32) {
    %c0_i32 = arith.constant 0 : i32
    %c0_i32_0 = arith.constant 0 : i32
    %c0_i32_1 = arith.constant 0 : i32
    return %c0_i32, %c0_i32_0 : i32, i32
  }
  func.func @transform_5(%arg0: i32) -> (i32, i32) {
    %c0_i32 = arith.constant 0 : i32
    %c0_i32_0 = arith.constant 0 : i32
    %c0_i32_1 = arith.constant 0 : i32
    return %c0_i32, %c0_i32_0 : i32, i32
  }
  func.func @transform_6(%arg0: i32) -> (i32, i32) {
    %c0_i32 = arith.constant 0 : i32
    %c0_i32_0 = arith.constant 0 : i32
    %c0_i32_1 = arith.constant 0 : i32
    return %c0_i32, %c0_i32_0 : i32, i32
  }
  func.func @transform_7(%arg0: i32) -> (i32, i32) {
    %c0_i32 = arith.constant 0 : i32
    %c0_i32_0 = arith.constant 0 : i32
    %c0_i32_1 = arith.constant 0 : i32
    return %c0_i32, %c0_i32_0 : i32, i32
  }
  func.func @transform_8(%arg0: i32) -> (i32, i32) {
    %c0_i32 = arith.constant 0 : i32
    %c0_i32_0 = arith.constant 0 : i32
    %c0_i32_1 = arith.constant 0 : i32
    return %c0_i32, %c0_i32_0 : i32, i32
  }
  func.func @transform_9(%arg0: i32) -> (i32, i32) {
    %c0_i32 = arith.constant 0 : i32
    %c0_i32_0 = arith.constant 0 : i32
    %c0_i32_1 = arith.constant 0 : i32
    return %c0_i32, %c0_i32_0 : i32, i32
  }
  func.func @transform_10(%arg0: i32) -> (i32, i32) {
    %c0_i32 = arith.constant 0 : i32
    %c0_i32_0 = arith.constant 0 : i32
    %c0_i32_1 = arith.constant 0 : i32
    return %c0_i32, %c0_i32_0 : i32, i32
  }
  func.func @transform_11(%arg0: i32) -> (i32, i32) {
    %c0_i32 = arith.constant 0 : i32
    %c0_i32_0 = arith.constant 0 : i32
    %c0_i32_1 = arith.constant 0 : i32
    return %c0_i32, %c0_i32_0 : i32, i32
  }
  func.func @transform_12(%arg0: i32) -> (i32, i32) {
    %c0_i32 = arith.constant 0 : i32
    %c0_i32_0 = arith.constant 0 : i32
    return %arg0, %c0_i32 : i32, i32
  }
  func.func @transform_13(%arg0: i32) -> (i32, i32) {
    %c0_i32 = arith.constant 0 : i32
    %c0_i32_0 = arith.constant 0 : i32
    return %arg0, %c0_i32 : i32, i32
  }
  func.func @transform_14(%arg0: i32) -> (i32, i32) {
    %c0_i32 = arith.constant 0 : i32
    %c0_i32_0 = arith.constant 0 : i32
    return %arg0, %c0_i32 : i32, i32
  }
}

</mosaic_0001>

<bundles_post_ra>
// kernel: supcon_resnet_forward.1
= control target key start
LH: loop header
LB: loop body
LE: loop exit
PB: predicated region body
PF: predicated region fallthrough
CT: control target
= control target key end

     0   :  { %20 = vsyncpa [#allocation3], 0  ;;  %vm298_vm0 = vcmask 293888   ;;  %vm395_vm1 = vcmask 1041408   ;;  %s2555_s0 = inlined_call_operand.vmem [shape: bf16[512,36], index: 0, kind: input, shape index: {}]   ;;  %s2556_s1 = inlined_call_operand.vmem [shape: f32[2,512], index: 1, kind: input, shape index: {}]   ;;  %s2557_s2 = inlined_call_operand.vmem [shape: bf16[36,128], index: 2, kind: input, shape index: {}]   ;;  %s2558_s3 = inlined_call_operand.vmem [shape: f32[1,128], index: 3, kind: input, shape index: {}]   ;;  %s2559_s4 = inlined_call_operand.vmem [shape: bf16[128,128], index: 4, kind: input, shape index: {}]   ;;  %s2560_s5 = inlined_call_operand.vmem [shape: f32[1,128], index: 5, kind: input, shape index: {}]   ;;  %s2561_s6 = inlined_call_operand.vmem [shape: bf16[128,128], index: 6, kind: input, shape index: {}]   ;;  %s2562_s7 = inlined_call_operand.vmem [shape: f32[1,128], index: 7, kind: input, shape index: {}]   ;;  %s2563_s8 = inlined_call_operand.vmem [shape: bf16[128,128], index: 8, kind: input, shape index: {}]   ;;  %s2564_s9 = inlined_call_operand.vmem [shape: f32[1,128], index: 9, kind: input, shape index: {}]   ;;  %s2565_s10 = inlined_call_operand.vmem [shape: bf16[128,128], index: 10, kind: input, shape index: {}]   ;;  %s2566_s11 = inlined_call_operand.vmem [shape: f32[1,128], index: 11, kind: input, shape index: {}]   ;;  %s2567_s12 = inlined_call_operand.hbm [shape: f32[2,128], index: 12, kind: output, shape index: {0}]   ;;  %s2568_s13 = inlined_call_operand.hbm [shape: f32[2,128], index: 13, kind: output, shape index: {1}]   ;;  %s2569_s14 = inlined_call_operand.hbm [shape: f32[2,128], index: 14, kind: output, shape index: {2}]  }
   0x1   :  { %v1880_v0 = vld [vmem:[%s2557_s2] sm:$0xff]   ;;  %v1881_v1 = vld [vmem:[%s2557_s2 + $0x8] sm:$0xff]   ;;  %v1882_v2 = vld [vmem:[%s2557_s2 + $0x10] ss:$0 sps:$4 sm:$0x33]  }
   0x2   :  { %1659 = vmatprep.subr.bf16.mxu0 %v1880_v0  ;;  %v1883_v3 = vld [vmem:[%s2555_s0] sm:$0xff]   ;;  %v397_v4 = vsel %vm395_vm1, %v1882_v2, 0  ;;  %v1884_v5 = vld [vmem:[%s2555_s0 + $0x8] sm:$0xff]   ;;  %v1885_v6 = vld [vmem:[%s2555_s0 + $0x10] sm:$0xff]  }
   0x3   :  { %1660 = vmatpush3.bf16.msra.mxu0 %v1880_v0  ;;  %1665 = vmatprep.mubr.msk.bf16.mxu0 %vm298_vm0, %v1883_v3  ;;  %v1886_v7 = vld [vmem:[%s2555_s0 + $0x18] sm:$0xff]   ;;  %v1887_v8 = vld [vmem:[%s2555_s0 + $0x20] sm:$0xff]   ;;  %v1888_v9 = vld [vmem:[%s2555_s0 + $0x28] sm:$0xff]  }
   0x4   :  { %1661 = vmatprep.subr.bf16.mxu0 %v1881_v1  ;;  %v1889_v10 = vld [vmem:[%s2555_s0 + $0x30] sm:$0xff]   ;;  %v1890_v11 = vld [vmem:[%s2555_s0 + $0x38] sm:$0xff]   ;;  %v1891_v12 = vld [vmem:[%s2555_s0 + $0x40] sm:$0xff]  }
   0x5   :  { %v1892_v13 = vld [vmem:[%s2555_s0 + $0x48] sm:$0xff]   ;;  %v1893_v14 = vld [vmem:[%s2555_s0 + $0x50] sm:$0xff]   ;;  %v1894_v15 = vld [vmem:[%s2555_s0 + $0x58] sm:$0xff]  }
   0x6   :  { %v1895_v16 = vld [vmem:[%s2555_s0 + $0x60] sm:$0xff]  }
   0x7   :  { %1662 = vmatpush3.bf16.msra.mxu0 %v1881_v1 }
   0x8   :  { %1873 = vmatprep.subr.msk.bf16.mxu0 %vm395_vm1, %v1882_v2 }
   0xb   :  { %1664 = vmatpush3.bf16.msra.mxu0 %v397_v4 }
   0xe   :  { %1666 = vmatmul.mubr.msk.bf16.vlgmr.msra.gmra.mrb[0].mxu0 %vm298_vm0, %v1884_v5 }
   0xf   :  { %1669 = vmatprep.mubr.msk.bf16.mxu0 %vm298_vm0, %v1885_v6 }
  0x16   :  { %1670 = vmatmul.mubr.msk.bf16.gmra.mrb[4].mxu0 %vm298_vm0, %v1886_v7 }
  0x17   :  { %1673 = vmatprep.mubr.msk.bf16.mxu0 %vm298_vm0, %v1887_v8 }
  0x1e   :  { %1674 = vmatmul.mubr.msk.bf16.gmra.mrb[8].mxu0 %vm298_vm0, %v1888_v9 }
  0x1f   :  { %1677 = vmatprep.mubr.msk.bf16.mxu0 %vm298_vm0, %v1889_v10 }
  0x26   :  { %1678 = vmatmul.mubr.msk.bf16.gmra.mrb[12].mxu0 %vm298_vm0, %v1890_v11 }
  0x27   :  { %1681 = vmatprep.mubr.msk.bf16.mxu0 %vm298_vm0, %v1891_v12 }
  0x2e   :  { %1682 = vmatmul.mubr.msk.bf16.gmra.mrb[16].mxu0 %vm298_vm0, %v1892_v13 }
  0x2f   :  { %1685 = vmatprep.mubr.msk.bf16.mxu0 %vm298_vm0, %v1893_v14 }
  0x36   :  { %1686 = vmatmul.mubr.msk.bf16.gmra.mrb[20].mxu0 %vm298_vm0, %v1894_v15 }
  0x37   :  { %1689 = vmatprep.mubr.msk.bf16.mxu0 %vm298_vm0, %v1895_v16 }
  0x38   :  { %21 = vsyncpa [#allocation5], 0  ;;  %v1896_v17 = vld [vmem:[%s2555_s0 + $0x68] sm:$0xff]   ;;  %v1897_v18 = vld [vmem:[%s2555_s0 + $0x70] sm:$0xff]   ;;  %v2020_v36 = vmov 1983009808   ;;  %v758_v38 = vlaneseq }
  0x39   :  { %v1898_v19 = vld [vmem:[%s2555_s0 + $0x78] sm:$0xff]   ;;  %v1899_v20 = vld [vmem:[%s2555_s0 + $0x80] sm:$0xff]   ;;  %v1900_v21 = vld [vmem:[%s2555_s0 + $0x88] sm:$0xff]   ;;  %v756_v37 = vunpack.c.l.s4 %v2020_v36  ;;  %vm2022_vm2 = vmmov 0  }
  0x3a   :  { %v1901_v22 = vld [vmem:[%s2555_s0 + $0x90] sm:$0xff]   ;;  %v1902_v23 = vld [vmem:[%s2555_s0 + $0x98] sm:$0xff]   ;;  %v1903_v24 = vld [vmem:[%s2555_s0 + $0xa0] sm:$0xff]   ;;  %v759_v40 = vshrl.u32 %v758_v38, 7 }
  0x3b   :  { %v1904_v25 = vld [vmem:[%s2555_s0 + $0xa8] sm:$0xff]   ;;  %v1905_v26 = vld [vmem:[%s2555_s0 + $0xb0] sm:$0xff]   ;;  %v1906_v27 = vld [vmem:[%s2555_s0 + $0xb8] sm:$0xff]   ;;  %v757_v39 = vunpack.c.0.s8 %v756_v37 }
  0x3c   :  { %v1907_v28 = vld [vmem:[%s2555_s0 + $0xc0] sm:$0xff]   ;;  %v1908_v29 = vld [vmem:[%s2555_s0 + $0xc8] sm:$0xff]   ;;  %v1909_v30 = vld [vmem:[%s2555_s0 + $0xd0] sm:$0xff]  }
  0x3d   :  { %v1910_v31 = vld [vmem:[%s2555_s0 + $0xd8] sm:$0xff]   ;;  %v1911_v32 = vld [vmem:[%s2555_s0 + $0xe0] sm:$0xff]   ;;  %v1912_v33 = vld [vmem:[%s2555_s0 + $0xe8] sm:$0xff]   ;;  %v760_v41 = vsub.s32 %v757_v39, %v759_v40 }
  0x3e   :  { %1690 = vmatmul.mubr.msk.bf16.gmra.mrb[24].mxu0 %vm298_vm0, %v1896_v17  ;;  %v1913_v34 = vld [vmem:[%s2555_s0 + $0xf0] sm:$0xff]   ;;  %v1914_v35 = vld [vmem:[%s2555_s0 + $0xf8] sm:$0xff]   ;;  %v752_v42 = vld [vmem:[%s2556_s1] sm:$0xff] }
  0x3f   :  { %1693 = vmatprep.mubr.msk.bf16.mxu0 %vm298_vm0, %v1897_v18  ;;  %v2243_v43 = vrot.slane %v752_v42, %v760_v41  ;;  %v2250_v45 = vld [vmem:[%s2558_s3] ss:$0 sm:$0xff]  ;;  %v754_v49 = vcombine.high %v752_v42, %v752_v42 }
  0x41   :  { %v769_v44 = vcombine.high %v2243_v43, %v2243_v43  ;;  %v2256_v57 = vrot.slane %v754_v49, %v760_v41 }
  0x43   :  { %839 = vmatprep.mubr.f32.mxu1 %v769_v44 }
  0x46   :  { %1694 = vmatmul.mubr.msk.bf16.gmra.mrb[28].mxu0 %vm298_vm0, %v1898_v19 }
  0x47   :  { %1697 = vmatprep.mubr.msk.bf16.mxu0 %vm298_vm0, %v1899_v20 }
  0x4e   :  { %1698 = vmatmul.mubr.msk.bf16.gmra.mrb[32].mxu0 %vm298_vm0, %v1900_v21 }
  0x4f   :  { %1701 = vmatprep.mubr.msk.bf16.mxu0 %vm298_vm0, %v1901_v22 }
  0x56   :  { %1702 = vmatmul.mubr.msk.bf16.gmra.mrb[36].mxu0 %vm298_vm0, %v1902_v23 }
  0x57   :  { %1705 = vmatprep.mubr.msk.bf16.mxu0 %vm298_vm0, %v1903_v24 }
  0x5e   :  { %1706 = vmatmul.mubr.msk.bf16.gmra.mrb[40].mxu0 %vm298_vm0, %v1904_v25 }
  0x5f   :  { %1709 = vmatprep.mubr.msk.bf16.mxu0 %vm298_vm0, %v1905_v26 }
  0x66   :  { %1710 = vmatmul.mubr.msk.bf16.gmra.mrb[44].mxu0 %vm298_vm0, %v1906_v27 }
  0x67   :  { %1713 = vmatprep.mubr.msk.bf16.mxu0 %vm298_vm0, %v1907_v28 }
  0x6e   :  { %1714 = vmatmul.mubr.msk.bf16.gmra.mrb[48].mxu0 %vm298_vm0, %v1908_v29 }
  0x6f   :  { %1717 = vmatprep.mubr.msk.bf16.mxu0 %vm298_vm0, %v1909_v30 }
  0x76   :  { %1718 = vmatmul.mubr.msk.bf16.gmra.mrb[52].mxu0 %vm298_vm0, %v1910_v31 }
  0x77   :  { %1721 = vmatprep.mubr.msk.bf16.mxu0 %vm298_vm0, %v1911_v32 }
  0x7e   :  { %1722 = vmatmul.mubr.msk.bf16.gmra.mrb[56].mxu0 %vm298_vm0, %v1912_v33 }
  0x7f   :  { %1725 = vmatprep.mubr.msk.bf16.mxu0 %vm298_vm0, %v1913_v34 }
  0x86   :  { %1726 = vmatmul.mubr.msk.bf16.gmra.mrb[60].mxu0 %vm298_vm0, %v1914_v35 }
  0xe1   :  { %v1667_v46 = vpop.f32.mrb[0].mxu0 }
  0xe2   :  { %v442_v47 = vadd.f32 %v1667_v46, %v2250_v45  ;;  %v433_v48 = vpop.f32.mrb[1].mxu0 }
  0xe3   :  { %v434_v50 = vadd.f32 %v2250_v45, %v433_v48  ;;  %v1668_v51 = vpop.f32.mrb[2].mxu0 }
  0xe4   :  { %v445_v52 = vadd.f32 %v1668_v51, %v2250_v45  ;;  %v436_v53 = vpop.f32.mrb[3].mxu0  ;;  %v690_v55 = vmax.f32 %v442_v47, 0.0 }
  0xe5   :  { %v437_v54 = vadd.f32 %v2250_v45, %v436_v53  ;;  %v688_v58 = vmax.f32 %v434_v50, 0.0 }
  0xe6   :  { %v691_v56 = vmax.f32 %v445_v52, 0.0 }
  0xe7   :  { %v689_v59 = vmax.f32 %v437_v54, 0.0 }
  0xe8   :  { %v2258_v60 = vpack.c.bf16 %v691_v56, %v690_v55 }
  0xe9   :  { %v1671_v61 = vpop.f32.mrb[4].mxu0  ;;  %v2260_v62 = vpack.c.bf16 %v689_v59, %v688_v58 }
  0xea   :  { %v458_v63 = vadd.f32 %v1671_v61, %v2250_v45  ;;  %v449_v0 = vpop.f32.mrb[5].mxu0 }
  0xeb   :  { %v450_v1 = vadd.f32 %v2250_v45, %v449_v0  ;;  %v1672_v2 = vpop.f32.mrb[6].mxu0 }
  0xec   :  { %v461_v3 = vadd.f32 %v1672_v2, %v2250_v45  ;;  %v452_v4 = vpop.f32.mrb[7].mxu0  ;;  %v694_v6 = vmax.f32 %v458_v63, 0.0 }
  0xed   :  { %v453_v5 = vadd.f32 %v2250_v45, %v452_v4  ;;  %v692_v8 = vmax.f32 %v450_v1, 0.0 }
  0xee   :  { %v695_v7 = vmax.f32 %v461_v3, 0.0 }
  0xef   :  { %v693_v9 = vmax.f32 %v453_v5, 0.0 }
  0xf0   :  { %v2266_v10 = vpack.c.bf16 %v695_v7, %v694_v6 }
  0xf1   :  { %v2268_v11 = vpack.c.bf16 %v693_v9, %v692_v8  ;;  %v1675_v12 = vpop.f32.mrb[8].mxu0 }
  0xf2   :  { %v474_v13 = vadd.f32 %v1675_v12, %v2250_v45  ;;  %v465_v14 = vpop.f32.mrb[9].mxu0 }
  0xf3   :  { %v466_v15 = vadd.f32 %v2250_v45, %v465_v14  ;;  %v1676_v16 = vpop.f32.mrb[10].mxu0 }
  0xf4   :  { %v477_v17 = vadd.f32 %v1676_v16, %v2250_v45  ;;  %v468_v18 = vpop.f32.mrb[11].mxu0  ;;  %v698_v20 = vmax.f32 %v474_v13, 0.0 }
  0xf5   :  { %v469_v19 = vadd.f32 %v2250_v45, %v468_v18  ;;  %v696_v22 = vmax.f32 %v466_v15, 0.0 }
  0xf6   :  { %v699_v21 = vmax.f32 %v477_v17, 0.0 }
  0xf7   :  { %v697_v23 = vmax.f32 %v469_v19, 0.0 }
  0xf8   :  { %v2274_v24 = vpack.c.bf16 %v699_v21, %v698_v20 }
  0xf9   :  { %v2276_v25 = vpack.c.bf16 %v697_v23, %v696_v22  ;;  %v1679_v26 = vpop.f32.mrb[12].mxu0 }
  0xfa   :  { %v490_v27 = vadd.f32 %v1679_v26, %v2250_v45  ;;  %v481_v28 = vpop.f32.mrb[13].mxu0 }
  0xfb   :  { %v482_v29 = vadd.f32 %v2250_v45, %v481_v28  ;;  %v1680_v30 = vpop.f32.mrb[14].mxu0 }
  0xfc   :  { %v493_v31 = vadd.f32 %v1680_v30, %v2250_v45  ;;  %v484_v32 = vpop.f32.mrb[15].mxu0  ;;  %v702_v34 = vmax.f32 %v490_v27, 0.0 }
  0xfd   :  { %v485_v33 = vadd.f32 %v2250_v45, %v484_v32  ;;  %v700_v36 = vmax.f32 %v482_v29, 0.0 }
  0xfe   :  { %v703_v35 = vmax.f32 %v493_v31, 0.0 }
  0xff   :  { %v701_v37 = vmax.f32 %v485_v33, 0.0 }
 0x100   :  { %v2282_v38 = vpack.c.bf16 %v703_v35, %v702_v34 }
 0x101   :  { %v2284_v39 = vpack.c.bf16 %v701_v37, %v700_v36  ;;  %v1683_v40 = vpop.f32.mrb[16].mxu0 }
 0x102   :  { %v506_v41 = vadd.f32 %v1683_v40, %v2250_v45  ;;  %v497_v42 = vpop.f32.mrb[17].mxu0 }
 0x103   :  { %v498_v44 = vadd.f32 %v2250_v45, %v497_v42  ;;  %v1684_v46 = vpop.f32.mrb[18].mxu0 }
 0x104   :  { %v509_v47 = vadd.f32 %v1684_v46, %v2250_v45  ;;  %v500_v48 = vpop.f32.mrb[19].mxu0  ;;  %v706_v50 = vmax.f32 %v506_v41, 0.0 }
 0x105   :  { %v501_v49 = vadd.f32 %v2250_v45, %v500_v48  ;;  %v704_v52 = vmax.f32 %v498_v44, 0.0 }
 0x106   :  { %v707_v51 = vmax.f32 %v509_v47, 0.0 }
 0x107   :  { %v705_v53 = vmax.f32 %v501_v49, 0.0 }
 0x108   :  { %v1813_v54 = vpack.c.bf16 %v707_v51, %v706_v50 }
 0x109   :  { %v1687_v55 = vpop.f32.mrb[20].mxu0  ;;  %v1809_v56 = vpack.c.bf16 %v705_v53, %v704_v52  ;;  %v770_v52 = vcombine.high %v2256_v57, %v2256_v57 }
 0x10a   :  { %v522_v58 = vadd.f32 %v1687_v55, %v2250_v45  ;;  %v513_v59 = vpop.f32.mrb[21].mxu0 }
 0x10b   :  { %v514_v61 = vadd.f32 %v2250_v45, %v513_v59  ;;  %v1688_v63 = vpop.f32.mrb[22].mxu0  ;;  %1810 = vmatprep.subr.bf16.mxu1 %v1809_v56 }
 0x10c   :  { %v525_v0 = vadd.f32 %v1688_v63, %v2250_v45  ;;  %v516_v1 = vpop.f32.mrb[23].mxu0  ;;  %1812 = vmatpush3.bf16.msra.mxu1 %v2260_v62  ;;  %v710_v3 = vmax.f32 %v522_v58, 0.0 }
 0x10d   :  { %v517_v2 = vadd.f32 %v2250_v45, %v516_v1  ;;  %1814 = vmatprep.subr.bf16.mxu1 %v1813_v54  ;;  %v708_v5 = vmax.f32 %v514_v61, 0.0 }
 0x10e   :  { %v711_v4 = vmax.f32 %v525_v0, 0.0 }
 0x10f   :  { %v709_v6 = vmax.f32 %v517_v2, 0.0 }
 0x110   :  { %v1821_v7 = vpack.c.bf16 %v711_v4, %v710_v3  ;;  %1816 = vmatpush3.bf16.msra.mxu1 %v2258_v60 }
 0x111   :  { %v1817_v8 = vpack.c.bf16 %v709_v6, %v708_v5  ;;  %v1691_v9 = vpop.f32.mrb[24].mxu0 }
 0x112   :  { %v538_v12 = vadd.f32 %v1691_v9, %v2250_v45  ;;  %v529_v13 = vpop.f32.mrb[25].mxu0 }
 0x113   :  { %v530_v14 = vadd.f32 %v2250_v45, %v529_v13  ;;  %v1692_v15 = vpop.f32.mrb[26].mxu0  ;;  %1818 = vmatprep.subr.bf16.mxu1 %v1817_v8 }
 0x114   :  { %v541_v62 = vadd.f32 %v1692_v15, %v2250_v45  ;;  %v532_v16 = vpop.f32.mrb[27].mxu0  ;;  %1820 = vmatpush3.bf16.msra.mxu1 %v2268_v11  ;;  %v714_v18 = vmax.f32 %v538_v12, 0.0 }
 0x115   :  { %v533_v17 = vadd.f32 %v2250_v45, %v532_v16  ;;  %1822 = vmatprep.subr.bf16.mxu1 %v1821_v7  ;;  %v712_v60 = vmax.f32 %v530_v14, 0.0 }
 0x116   :  { %v715_v19 = vmax.f32 %v541_v62, 0.0 }
 0x117   :  { %v713_v20 = vmax.f32 %v533_v17, 0.0 }
 0x118   :  { %v1829_v21 = vpack.c.bf16 %v715_v19, %v714_v18  ;;  %1824 = vmatpush3.bf16.msra.mxu1 %v2266_v10 }
 0x119   :  { %v1825_v22 = vpack.c.bf16 %v713_v20, %v712_v60  ;;  %v1695_v23 = vpop.f32.mrb[28].mxu0 }
 0x11a   :  { %v554_v26 = vadd.f32 %v1695_v23, %v2250_v45  ;;  %v545_v27 = vpop.f32.mrb[29].mxu0 }
 0x11b   :  { %v546_v28 = vadd.f32 %v2250_v45, %v545_v27  ;;  %v1696_v29 = vpop.f32.mrb[30].mxu0  ;;  %1826 = vmatprep.subr.bf16.mxu1 %v1825_v22 }
 0x11c   :  { %v557_v11 = vadd.f32 %v1696_v29, %v2250_v45  ;;  %v548_v30 = vpop.f32.mrb[31].mxu0  ;;  %1828 = vmatpush3.bf16.msra.mxu1 %v2276_v25  ;;  %v718_v32 = vmax.f32 %v554_v26, 0.0 }
 0x11d   :  { %v549_v31 = vadd.f32 %v2250_v45, %v548_v30  ;;  %1830 = vmatprep.subr.bf16.mxu1 %v1829_v21  ;;  %v716_v10 = vmax.f32 %v546_v28, 0.0 }
 0x11e   :  { %v719_v33 = vmax.f32 %v557_v11, 0.0 }
 0x11f   :  { %v717_v34 = vmax.f32 %v549_v31, 0.0 }
 0x120   :  { %v1837_v35 = vpack.c.bf16 %v719_v33, %v718_v32  ;;  %1832 = vmatpush3.bf16.msra.mxu1 %v2274_v24 }
 0x121   :  { %v1833_v36 = vpack.c.bf16 %v717_v34, %v716_v10  ;;  %v1699_v37 = vpop.f32.mrb[32].mxu0 }
 0x122   :  { %v570_v40 = vadd.f32 %v1699_v37, %v2250_v45  ;;  %v561_v41 = vpop.f32.mrb[33].mxu0 }
 0x123   :  { %v562_v42 = vadd.f32 %v2250_v45, %v561_v41  ;;  %v1700_v44 = vpop.f32.mrb[34].mxu0  ;;  %1834 = vmatprep.subr.bf16.mxu1 %v1833_v36 }
 0x124   :  { %v573_v25 = vadd.f32 %v1700_v44, %v2250_v45  ;;  %v564_v46 = vpop.f32.mrb[35].mxu0  ;;  %1836 = vmatpush3.bf16.msra.mxu1 %v2284_v39  ;;  %v722_v48 = vmax.f32 %v570_v40, 0.0 }
 0x125   :  { %v565_v47 = vadd.f32 %v2250_v45, %v564_v46  ;;  %1838 = vmatprep.subr.bf16.mxu1 %v1837_v35  ;;  %v720_v24 = vmax.f32 %v562_v42, 0.0 }
 0x126   :  { %v723_v49 = vmax.f32 %v573_v25, 0.0 }
 0x127   :  { %v721_v50 = vmax.f32 %v565_v47, 0.0 }
 0x128   :  { %v2313_v51 = vpack.c.bf16 %v723_v49, %v722_v48  ;;  %1840 = vmatpush3.bf16.msra.mxu1 %v2282_v38 }
 0x129   :  { %v2318_v53 = vpack.c.bf16 %v721_v50, %v720_v24  ;;  %v1703_v54 = vpop.f32.mrb[36].mxu0 }
 0x12a   :  { %v586_v55 = vadd.f32 %v1703_v54, %v2250_v45  ;;  %v577_v39 = vpop.f32.mrb[37].mxu0 }
 0x12b   :  { %v578_v56 = vadd.f32 %v2250_v45, %v577_v39  ;;  %v1704_v58 = vpop.f32.mrb[38].mxu0  ;;  %840 = vmatmul.mubr.f32.vlgmr.msra.gmra.mrb[0].mxu1 %v2243_v43 }
 0x12c   :  { %v589_v59 = vadd.f32 %v1704_v58, %v2250_v45  ;;  %v580_v61 = vpop.f32.mrb[39].mxu0  ;;  %909 = vmatprep.mubr.f32.mxu1 %v770_v52  ;;  %v726_v63 = vmax.f32 %v586_v55, 0.0 }
 0x12d   :  { %v581_v38 = vadd.f32 %v2250_v45, %v580_v61  ;;  %v724_v1 = vmax.f32 %v578_v56, 0.0 }
 0x12e   :  { %v727_v0 = vmax.f32 %v589_v59, 0.0 }
 0x12f   :  { %v725_v2 = vmax.f32 %v581_v38, 0.0 }
 0x130   :  { %v2325_v3 = vpack.c.bf16 %v727_v0, %v726_v63 }
 0x131   :  { %v2327_v4 = vpack.c.bf16 %v725_v2, %v724_v1  ;;  %v1707_v5 = vpop.f32.mrb[40].mxu0 }
 0x132   :  { %v602_v6 = vadd.f32 %v1707_v5, %v2250_v45  ;;  %v593_v7 = vpop.f32.mrb[41].mxu0 }
 0x133   :  { %v594_v43 = vadd.f32 %v2250_v45, %v593_v7  ;;  %v1708_v8 = vpop.f32.mrb[42].mxu0 }
 0x134   :  { %v605_v9 = vadd.f32 %v1708_v8, %v2250_v45  ;;  %v596_v12 = vpop.f32.mrb[43].mxu0  ;;  %v730_v14 = vmax.f32 %v602_v6, 0.0 }
 0x135   :  { %v597_v13 = vadd.f32 %v2250_v45, %v596_v12  ;;  %v728_v62 = vmax.f32 %v594_v43, 0.0 }
 0x136   :  { %v731_v15 = vmax.f32 %v605_v9, 0.0 }
 0x137   :  { %v729_v16 = vmax.f32 %v597_v13, 0.0 }
 0x138   :  { %v2333_v17 = vpack.c.bf16 %v731_v15, %v730_v14 }
 0x139   :  { %v2335_v18 = vpack.c.bf16 %v729_v16, %v728_v62  ;;  %v1711_v19 = vpop.f32.mrb[44].mxu0 }
 0x13a   :  { %v618_v60 = vadd.f32 %v1711_v19, %v2250_v45  ;;  %v609_v20 = vpop.f32.mrb[45].mxu0 }
 0x13b   :  { %v610_v21 = vadd.f32 %v2250_v45, %v609_v20  ;;  %v1712_v22 = vpop.f32.mrb[46].mxu0 }
 0x13c   :  { %v621_v23 = vadd.f32 %v1712_v22, %v2250_v45  ;;  %v612_v26 = vpop.f32.mrb[47].mxu0  ;;  %v734_v28 = vmax.f32 %v618_v60, 0.0 }
 0x13d   :  { %v613_v27 = vadd.f32 %v2250_v45, %v612_v26  ;;  %v732_v11 = vmax.f32 %v610_v21, 0.0 }
 0x13e   :  { %v735_v29 = vmax.f32 %v621_v23, 0.0 }
 0x13f   :  { %v733_v30 = vmax.f32 %v613_v27, 0.0 }
 0x140   :  { %v2341_v31 = vpack.c.bf16 %v735_v29, %v734_v28 }
 0x141   :  { %v2343_v32 = vpack.c.bf16 %v733_v30, %v732_v11  ;;  %v1715_v33 = vpop.f32.mrb[48].mxu0  ;;  %v1919_v11 = vld [vmem:[%s2559_s4 + $0x18] sm:$0xff]   ;;  %v1920_v30 = vld [vmem:[%s2559_s4 + $0x20] sm:$0xff]  }
 0x142   :  { %v634_v10 = vadd.f32 %v1715_v33, %v2250_v45  ;;  %v625_v34 = vpop.f32.mrb[49].mxu0  ;;  %v1923_v33 = vld [vmem:[%s2559_s4 + $0x38] sm:$0xff]  }
 0x143   :  { %v626_v35 = vadd.f32 %v2250_v45, %v625_v34  ;;  %v1716_v36 = vpop.f32.mrb[50].mxu0  ;;  %v1925_v34 = vld [vmem:[%s2563_s8 + $0x8] sm:$0xff]  }
 0x144   :  { %v637_v37 = vadd.f32 %v1716_v36, %v2250_v45  ;;  %v628_v40 = vpop.f32.mrb[51].mxu0  ;;  %v738_v42 = vmax.f32 %v634_v10, 0.0  ;;  %v1924_v10 = vld [vmem:[%s2563_s8] sm:$0xff]   ;;  %v1927_v36 = vld [vmem:[%s2563_s8 + $0x18] sm:$0xff]  }
 0x145   :  { %v629_v41 = vadd.f32 %v2250_v45, %v628_v40  ;;  %v736_v25 = vmax.f32 %v626_v35, 0.0  ;;  %v1926_v35 = vld [vmem:[%s2563_s8 + $0x10] sm:$0xff]   ;;  %v1929_v40 = vld [vmem:[%s2563_s8 + $0x28] sm:$0xff]  }
 0x146   :  { %v739_v44 = vmax.f32 %v637_v37, 0.0  ;;  %v1928_v37 = vld [vmem:[%s2563_s8 + $0x20] sm:$0xff]  }
 0x147   :  { %v737_v46 = vmax.f32 %v629_v41, 0.0  ;;  %v1930_v41 = vld [vmem:[%s2563_s8 + $0x30] sm:$0xff]  }
 0x148   :  { %v1845_v47 = vpack.c.bf16 %v739_v44, %v738_v42  ;;  %v1935_v42 = vld [vmem:[%s2563_s8 + $0x38] sm:$0xff]  }
 0x149   :  { %v1841_v48 = vpack.c.bf16 %v737_v46, %v736_v25  ;;  %v1719_v49 = vpop.f32.mrb[52].mxu0 }
 0x14a   :  { %v650_v24 = vadd.f32 %v1719_v49, %v2250_v45  ;;  %v641_v50 = vpop.f32.mrb[53].mxu0 }
 0x14b   :  { %v642_v52 = vadd.f32 %v2250_v45, %v641_v50  ;;  %v1720_v54 = vpop.f32.mrb[54].mxu0  ;;  %1842 = vmatprep.subr.bf16.mxu1 %v1841_v48  ;;  %v1931_v50 = vld [vmem:[%s2561_s6] sm:$0xff]  }
 0x14c   :  { %v653_v55 = vadd.f32 %v1720_v54, %v2250_v45  ;;  %v644_v39 = vpop.f32.mrb[55].mxu0  ;;  %1844 = vmatpush3.bf16.msra.mxu1 %v2318_v53  ;;  %v742_v58 = vmax.f32 %v650_v24, 0.0  ;;  %v1932_v54 = vld [vmem:[%s2561_s6 + $0x8] sm:$0xff]  }
 0x14d   :  { %v645_v56 = vadd.f32 %v2250_v45, %v644_v39  ;;  %1846 = vmatprep.subr.bf16.mxu1 %v1845_v47  ;;  %v740_v61 = vmax.f32 %v642_v52, 0.0  ;;  %v1934_v39 = vld [vmem:[%s2561_s6 + $0x18] sm:$0xff]  }
 0x14e   :  { %v743_v59 = vmax.f32 %v653_v55, 0.0  ;;  %v1933_v55 = vld [vmem:[%s2561_s6 + $0x10] sm:$0xff]  }
 0x14f   :  { %v741_v38 = vmax.f32 %v645_v56, 0.0  ;;  %v1936_v56 = vld [vmem:[%s2561_s6 + $0x20] sm:$0xff]  }
 0x150   :  { %v1853_v63 = vpack.c.bf16 %v743_v59, %v742_v58  ;;  %1848 = vmatpush3.bf16.msra.mxu1 %v2313_v51  ;;  %v1937_v58 = vld [vmem:[%s2561_s6 + $0x28] sm:$0xff]   ;;  %v1938_v59 = vld [vmem:[%s2561_s6 + $0x30] sm:$0xff]  }
 0x151   :  { %v1849_v0 = vpack.c.bf16 %v741_v38, %v740_v61  ;;  %v1723_v1 = vpop.f32.mrb[56].mxu0  ;;  %v1939_v61 = vld [vmem:[%s2561_s6 + $0x38] sm:$0xff]   ;;  %v1482_v38 = vld [vmem:[%s2560_s5] ss:$0 sm:$0xff] }
 0x152   :  { %v666_v2 = vadd.f32 %v1723_v1, %v2250_v45  ;;  %v657_v5 = vpop.f32.mrb[57].mxu0 }
 0x153   :  { %v658_v6 = vadd.f32 %v2250_v45, %v657_v5  ;;  %v1724_v7 = vpop.f32.mrb[58].mxu0  ;;  %1850 = vmatprep.subr.bf16.mxu1 %v1849_v0  ;;  %v1940_v5 = vld [vmem:[%s2565_s10] sm:$0xff]  }
 0x154   :  { %v669_v53 = vadd.f32 %v1724_v7, %v2250_v45  ;;  %v660_v43 = vpop.f32.mrb[59].mxu0  ;;  %1852 = vmatpush3.bf16.msra.mxu1 %v2327_v4  ;;  %v746_v9 = vmax.f32 %v666_v2, 0.0 }
 0x155   :  { %v661_v8 = vadd.f32 %v2250_v45, %v660_v43  ;;  %1854 = vmatprep.subr.bf16.mxu1 %v1853_v63  ;;  %v744_v51 = vmax.f32 %v658_v6, 0.0  ;;  %v1942_v43 = vld [vmem:[%s2565_s10 + $0x10] sm:$0xff]  }
 0x156   :  { %v747_v12 = vmax.f32 %v669_v53, 0.0  ;;  %v1941_v53 = vld [vmem:[%s2565_s10 + $0x8] sm:$0xff]  }
 0x157   :  { %v745_v13 = vmax.f32 %v661_v8, 0.0  ;;  %v1943_v8 = vld [vmem:[%s2565_s10 + $0x18] sm:$0xff]  }
 0x158   :  { %v1861_v14 = vpack.c.bf16 %v747_v12, %v746_v9  ;;  %1856 = vmatpush3.bf16.msra.mxu1 %v2325_v3  ;;  %v1944_v9 = vld [vmem:[%s2565_s10 + $0x20] sm:$0xff]   ;;  %v1945_v12 = vld [vmem:[%s2565_s10 + $0x28] sm:$0xff]  }
 0x159   :  { %v1857_v15 = vpack.c.bf16 %v745_v13, %v744_v51  ;;  %v1727_v62 = vpop.f32.mrb[60].mxu0  ;;  %v1946_v51 = vld [vmem:[%s2565_s10 + $0x30] sm:$0xff]   ;;  %v1947_v13 = vld [vmem:[%s2565_s10 + $0x38] sm:$0xff]  }
 0x15a   :  { %v682_v16 = vadd.f32 %v1727_v62, %v2250_v45  ;;  %v673_v19 = vpop.f32.mrb[61].mxu0 }
 0x15b   :  { %v674_v60 = vadd.f32 %v2250_v45, %v673_v19  ;;  %v1728_v20 = vpop.f32.mrb[62].mxu0  ;;  %1858 = vmatprep.subr.bf16.mxu1 %v1857_v15  ;;  %v1500_v15 = vld [vmem:[%s2564_s9] ss:$0 sm:$0xff]  ;;  %s2023_s9 = smov [#allocation4]  }
 0x15c   :  { %v685_v4 = vadd.f32 %v1728_v20, %v2250_v45  ;;  %v676_v21 = vpop.f32.mrb[63].mxu0  ;;  %1860 = vmatpush3.bf16.msra.mxu1 %v2335_v18  ;;  %v750_v23 = vmax.f32 %v682_v16, 0.0  ;;  %v2021_v18 = vmov 0.0   ;;  %s1389_s19 = sshll.u32 %s2023_s9, 4  ;;  %s1390_s19 = int_to_ptr.vmem [resolvable:$true] %s1389_s19 }
 0x15d   :  { %v677_v22 = vadd.f32 %v2250_v45, %v676_v21  ;;  %1862 = vmatprep.subr.bf16.mxu1 %v1861_v14  ;;  %v748_v3 = vmax.f32 %v674_v60, 0.0  ;;  %v1916_v45 = vld [vmem:[%s2559_s4] sm:$0xff]   ;;  %1769 = vmatprep.subr.bf16.mxu0 %v2021_v18  ;;  %s1950_s20 = scalar_lea.vmem %s1390_s19, 32  ;;  %p1955_p1 = scmp.lt.s32.totalorder %s1390_s19, %s1390_s19 }
 0x15e   :  { %v751_v26 = vmax.f32 %v685_v4, 0.0  ;;  %1785 = vmatprep.mubr.msk.bf16.mxu0 %vm2022_vm2, %v2021_v18  ;;  %1770 = vmatpush3.bf16.msra.mxu0 %v1924_v10  ;;  %v1491_v14 = vld [vmem:[%s2562_s7] ss:$0 sm:$0xff]  ;;  %p1951_p0 = scmp.ne.s32.totalorder %s1390_s19, %s1950_s20  ;;  %p1956_p2 = scmp.lt.s32.totalorder %s1950_s20, %s1950_s20 }
 0x15f   :  { %v749_v27 = vmax.f32 %v677_v22, 0.0  ;;  %1771 = vmatprep.subr.bf16.mxu0 %v2021_v18 }
 0x160   :  { %v1869_v28 = vpack.c.bf16 %v751_v26, %v750_v23  ;;  %1864 = vmatpush3.bf16.msra.mxu1 %v2333_v17  ;;  %v1917_v17 = vld [vmem:[%s2559_s4 + $0x8] sm:$0xff]   ;;  %p1957_p3 = por %p1956_p2, %p1955_p1 }
 0x161   :  { %v1865_v29 = vpack.c.bf16 %v749_v27, %v748_v3 }
 0x162   :  { %1772 = vmatpush3.bf16.msra.mxu0 %v1925_v34  ;;  %p1958_p4 = pnand %p1957_p3, %p1951_p0 }
 0x163   :  { %1866 = vmatprep.subr.bf16.mxu1 %v1865_v29  ;;  %1773 = vmatprep.subr.bf16.mxu0 %v2021_v18 }
 0x164   :  { %1868 = vmatpush3.bf16.msra.mxu1 %v2343_v32  ;;  %v1922_v32 = vld [vmem:[%s2559_s4 + $0x30] sm:$0xff]  }
 0x165   :  { %1870 = vmatprep.subr.bf16.mxu1 %v1869_v28  ;;  %v1509_v28 = vld [vmem:[%s2566_s11] ss:$0 sm:$0xff] }
 0x166   :  { %1774 = vmatpush3.bf16.msra.mxu0 %v1926_v35 }
 0x167   :  { %1775 = vmatprep.subr.bf16.mxu0 %v2021_v18 }
 0x168   :  { %1872 = vmatpush3.bf16.msra.mxu1 %v2341_v31  ;;  %v1921_v31 = vld [vmem:[%s2559_s4 + $0x28] sm:$0xff]  }
 0x169   :  { %1729 = vmatprep.subr.bf16.mxu1 %v2021_v18 }
 0x16a   :  { %1776 = vmatpush3.bf16.msra.mxu0 %v1927_v36 }
 0x16b   :  { %910 = vmatmul.mubr.f32.vlgmr.msra.gmra.mrb[2].mxu1 %v2256_v57  ;;  %v1918_v57 = vld [vmem:[%s2559_s4 + $0x10] sm:$0xff]   ;;  %1777 = vmatprep.subr.bf16.mxu0 %v2021_v18 }
 0x16c   :  { %1730 = vmatpush3.bf16.msra.mxu1 %v1916_v45  ;;  %1745 = vmatprep.mubr.msk.bf16.mxu1 %vm2022_vm2, %v2021_v18 }
 0x16d   :  { %1731 = vmatprep.subr.bf16.mxu1 %v2021_v18 }
 0x16e   :  { %1778 = vmatpush3.bf16.msra.mxu0 %v1928_v37 }
 0x16f   :  { %1779 = vmatprep.subr.bf16.mxu0 %v2021_v18 }
 0x170   :  { %1732 = vmatpush3.bf16.msra.mxu1 %v1917_v17 }
 0x171   :  { %1733 = vmatprep.subr.bf16.mxu1 %v2021_v18 }
 0x172   :  { %1780 = vmatpush3.bf16.msra.mxu0 %v1929_v40 }
 0x173   :  { %1781 = vmatprep.subr.bf16.mxu0 %v2021_v18 }
 0x174   :  { %1734 = vmatpush3.bf16.msra.mxu1 %v1918_v57 }
 0x175   :  { %1735 = vmatprep.subr.bf16.mxu1 %v2021_v18 }
 0x176   :  { %1782 = vmatpush3.bf16.msra.mxu0 %v1930_v41 }
 0x177   :  { %1783 = vmatprep.subr.bf16.mxu0 %v2021_v18 }
 0x178   :  { %1736 = vmatpush3.bf16.msra.mxu1 %v1919_v11 }
 0x179   :  { %1737 = vmatprep.subr.bf16.mxu1 %v2021_v18 }
 0x17a   :  { %1784 = vmatpush3.bf16.msra.mxu0 %v1935_v42 }
 0x17c   :  { %1738 = vmatpush3.bf16.msra.mxu1 %v1920_v30 }
 0x17d   :  { %1739 = vmatprep.subr.bf16.mxu1 %v2021_v18 }
 0x180   :  { %1740 = vmatpush3.bf16.msra.mxu1 %v1921_v31 }
 0x181   :  { %1741 = vmatprep.subr.bf16.mxu1 %v2021_v18 }
 0x184   :  { %1742 = vmatpush3.bf16.msra.mxu1 %v1922_v32 }
 0x185   :  { %1743 = vmatprep.subr.bf16.mxu1 %v2021_v18 }
 0x188   :  { %1744 = vmatpush3.bf16.msra.mxu1 %v1923_v33 }
 0x189   :  { %1749 = vmatprep.subr.bf16.mxu1 %v2021_v18 }
 0x1fe   :  { %v1585_v44 = vpop.f32.mrb[0].mxu1 }
 0x1ff   :  { %v1586_v25 = vpop.f32.mrb[1].mxu1 }
 0x200   :  { %v1587_v46 = vadd.f32 %v1586_v25, %v1585_v44 }
 0x23e   :  { %v1620_v47 = vpop.f32.mrb[2].mxu1 }
 0x23f   :  { %v1621_v48 = vpop.f32.mrb[3].mxu1 }
 0x240   :  { %v1622_v49 = vadd.f32 %v1621_v48, %v1620_v47 }
 0x242   :  { %v912_v24 = vadd.f32 %v1622_v49, %v1587_v46 }
 0x244   :  { %v916_v52 = vpack.c.bf16 %v912_v24, %v912_v24  ;;  %915 = vst [vmem:[#allocation6] sm:$0x3] %v912_v24 }
 0x246   :  { %1746 = vmatmul.mubr.bf16.vlgmr.msra.gmra.mrb[4].mxu1 %v916_v52 }
 0x247   :  { %1750 = vmatpush3.bf16.msra.mxu1 %v1931_v50  ;;  %1765 = vmatprep.mubr.msk.bf16.mxu1 %vm2022_vm2, %v2021_v18 }
 0x248   :  { %1751 = vmatprep.subr.bf16.mxu1 %v2021_v18 }
 0x24b   :  { %1752 = vmatpush3.bf16.msra.mxu1 %v1932_v54 }
 0x24c   :  { %1753 = vmatprep.subr.bf16.mxu1 %v2021_v18 }
 0x24f   :  { %1754 = vmatpush3.bf16.msra.mxu1 %v1933_v55 }
 0x250   :  { %1755 = vmatprep.subr.bf16.mxu1 %v2021_v18 }
 0x253   :  { %1756 = vmatpush3.bf16.msra.mxu1 %v1934_v39 }
 0x254   :  { %1757 = vmatprep.subr.bf16.mxu1 %v2021_v18 }
 0x257   :  { %1758 = vmatpush3.bf16.msra.mxu1 %v1936_v56 }
 0x258   :  { %1759 = vmatprep.subr.bf16.mxu1 %v2021_v18 }
 0x25b   :  { %1760 = vmatpush3.bf16.msra.mxu1 %v1937_v58 }
 0x25c   :  { %1761 = vmatprep.subr.bf16.mxu1 %v2021_v18 }
 0x25f   :  { %1762 = vmatpush3.bf16.msra.mxu1 %v1938_v59 }
 0x260   :  { %1763 = vmatprep.subr.bf16.mxu1 %v2021_v18 }
 0x263   :  { %1764 = vmatpush3.bf16.msra.mxu1 %v1939_v61 }
 0x264   :  { %1789 = vmatprep.subr.bf16.mxu1 %v2021_v18 }
 0x319   :  { %v1022_v63 = vpop.f32.mrb[4].mxu1 }
 0x31a   :  { %v1023_v0 = vadd.f32 %v1482_v38, %v1022_v63  ;;  %v1747_v1 = vpop.f32.mrb[5].mxu1 }
 0x31b   :  { %v1025_v2 = vpop.f32.mrb[6].mxu1 }
 0x31c   :  { %v1028_v6 = vpack.c.bf16 %v1023_v0, %v1023_v0  ;;  %v1748_v7 = vpop.f32.mrb[7].mxu1 }
 0x31e   :  { %1766 = vmatmul.mubr.bf16.vlgmr.msra.gmra.mrb[8].mxu1 %v1028_v6  ;;  %1786 = vmatmul.mubr.bf16.vlgmr.msra.gmra.mrb[64].mxu0 %v1028_v6 }
 0x31f   :  { %1790 = vmatpush3.bf16.msra.mxu1 %v1940_v5  ;;  %1805 = vmatprep.mubr.msk.bf16.mxu1 %vm2022_vm2, %v2021_v18 }
 0x320   :  { %1791 = vmatprep.subr.bf16.mxu1 %v2021_v18 }
 0x323   :  { %1792 = vmatpush3.bf16.msra.mxu1 %v1941_v53 }
 0x324   :  { %1793 = vmatprep.subr.bf16.mxu1 %v2021_v18 }
 0x327   :  { %1794 = vmatpush3.bf16.msra.mxu1 %v1942_v43 }
 0x328   :  { %1795 = vmatprep.subr.bf16.mxu1 %v2021_v18 }
 0x32b   :  { %1796 = vmatpush3.bf16.msra.mxu1 %v1943_v8 }
 0x32c   :  { %1797 = vmatprep.subr.bf16.mxu1 %v2021_v18 }
 0x32f   :  { %1798 = vmatpush3.bf16.msra.mxu1 %v1944_v9 }
 0x330   :  { %1799 = vmatprep.subr.bf16.mxu1 %v2021_v18 }
 0x333   :  { %1800 = vmatpush3.bf16.msra.mxu1 %v1945_v12 }
 0x334   :  { %1801 = vmatprep.subr.bf16.mxu1 %v2021_v18 }
 0x337   :  { %1802 = vmatpush3.bf16.msra.mxu1 %v1946_v51 }
 0x338   :  { %1803 = vmatprep.subr.bf16.mxu1 %v2021_v18 }
 0x33b   :  { %1804 = vmatpush3.bf16.msra.mxu1 %v1947_v13 }
 0x3f1   :  { %v1134_v62 = vpop.f32.mrb[8].mxu1  ;;  %v1246_v16 = vpop.f32.mrb[64].mxu0 }
 0x3f2   :  { %v1135_v19 = vadd.f32 %v1491_v14, %v1134_v62  ;;  %v1247_v60 = vadd.f32 %v1500_v15, %v1246_v16  ;;  %v1767_v20 = vpop.f32.mrb[9].mxu1  ;;  %v1787_v4 = vpop.f32.mrb[65].mxu0 }
 0x3f3   :  { %v1137_v21 = vpop.f32.mrb[10].mxu1  ;;  %v1249_v22 = vpop.f32.mrb[66].mxu0 }
 0x3f4   :  { %1140 = vst [vmem:[#allocation4] sm:$0x3] %v1135_v19  ;;  %v1252_v23 = vmax.f32 %v1247_v60, 0.0  ;;  %v1768_v26 = vpop.f32.mrb[11].mxu1  ;;  %v1788_v3 = vpop.f32.mrb[67].mxu0 }
 0x3f6   :  { %v1253_v27 = vpack.c.bf16 %v1252_v23, %v1252_v23 }
 0x3f8   :  { %1806 = vmatmul.mubr.bf16.vlgmr.msra.gmra.mrb[12].mxu1 %v1253_v27 }
 0x4cb   :  { %v1359_v29 = vpop.f32.mrb[12].mxu1 }
 0x4cc   :  { %v1360_v45 = vadd.f32 %v1509_v28, %v1359_v29  ;;  %v1807_v18 = vpop.f32.mrb[13].mxu1 }
 0x4cd   :  { %v1362_v17 = vpop.f32.mrb[14].mxu1 }
 0x4ce   :  { %v1808_v57 = vpop.f32.mrb[15].mxu1  ;;  %v1365_v11 = vmul.f32 %v1360_v45, %v1360_v45 }
 0x4d0   :  { %v1366_v30 = vsel %vm395_vm1, %v1365_v11, 0.0 }
 0x4d1   :  { %1367 = vadd.xlane.f32.xlu0 %v1366_v30 }
 0x4d2   :  { %1961 = shalt.err (!%p1958_p4)
}
 0x4d3   :  { %s1962_s22 = scalar_lea.hbm %s2568_s13, 32 }
 0x4d4   :  { %p1963_p5 = scmp.ne.s32.totalorder %s2568_s13, %s1962_s22  ;;  %p1966_p6 = scmp.lt.u32.totalorder %s1962_s22, %s2568_s13 }
 0x4d6   :  { %p1968_p7 = pnand %p1966_p6, %p1963_p5 }
 0x4d8   :  { %1971 = shalt.err (!%p1968_p7)
}
 0x4d9   :  { %1392 = dma.vmem_to_hbm [thread:$0]  %s1390_s19, 32, %s2568_s13, [#allocation5]  }
 0x4da   :  { %s2024_s26 = smov [#allocation6]  }
 0x4db   :  { %s1399_s27 = sshll.u32 %s2024_s26, 4  ;;  %s1400_s27 = int_to_ptr.vmem [resolvable:$true] %s1399_s27 }
 0x4dc   :  { %s1972_s28 = scalar_lea.vmem %s1400_s27, 32  ;;  %p1977_p9 = scmp.lt.s32.totalorder %s1400_s27, %s1400_s27 }
 0x4dd   :  { %p1973_p8 = scmp.ne.s32.totalorder %s1400_s27, %s1972_s28  ;;  %p1978_p10 = scmp.lt.s32.totalorder %s1972_s28, %s1972_s28 }
 0x4df   :  { %p1979_p11 = por %p1978_p10, %p1977_p9 }
 0x4e1   :  { %p1980_p12 = pnand %p1979_p11, %p1973_p8 }
 0x4e3   :  { %1983 = shalt.err (!%p1980_p12)
}
 0x4e4   :  { %s1984_s30 = scalar_lea.hbm %s2569_s14, 32 }
 0x4e5   :  { %p1985_p13 = scmp.ne.s32.totalorder %s2569_s14, %s1984_s30  ;;  %p1988_p0 = scmp.lt.u32.totalorder %s1984_s30, %s2569_s14 }
 0x4e7   :  { %p1990_p1 = pnand %p1988_p0, %p1985_p13 }
 0x4e9   :  { %1993 = shalt.err (!%p1990_p1)
}
 0x4ea   :  { %1402 = dma.vmem_to_hbm [thread:$0]  %s1400_s27, 32, %s2569_s14, [#allocation5]  }
 0x4eb   :  { %s2025_s1 = smov [#allocation2]  }
 0x4ec   :  { %s1379_s3 = sshll.u32 %s2025_s1, 4  ;;  %s1380_s3 = int_to_ptr.vmem [resolvable:$true] %s1379_s3 }
 0x4ed   :  { %s1994_s18 = scalar_lea.vmem %s1380_s3, 32  ;;  %p1999_p3 = scmp.lt.s32.totalorder %s1380_s3, %s1380_s3 }
 0x4ee   :  { %p1995_p2 = scmp.ne.s32.totalorder %s1380_s3, %s1994_s18  ;;  %p2000_p4 = scmp.lt.s32.totalorder %s1994_s18, %s1994_s18 }
 0x4f0   :  { %p2001_p5 = por %p2000_p4, %p1999_p3 }
 0x4f2   :  { %p2002_p6 = pnand %p2001_p5, %p1995_p2 }
 0x55e   :  { %v1368_v31 = vpop.xlane.xlu0 %1367 }
 0x55f   :  { %v1369_v32 = vmax.f32 %v1368_v31, 1e-24 }
 0x561   :  { %1948 = vrsqrt.f32 %v1369_v32 }
 0x56b   :  { %v1949_v33 = vpop.eup %1948 }
 0x56c   :  { %v1371_v10 = vmul.f32 %v1949_v33, %v1360_v45 }
 0x56e   :  { %1372 = vst [vmem:[#allocation2] sm:$0x3] %v1371_v10 }
 0x56f   :  { %2005 = shalt.err (!%p2002_p6)
}
 0x570   :  { %s2006_s14 = scalar_lea.hbm %s2567_s12, 32 }
 0x571   :  { %p2007_p7 = scmp.ne.s32.totalorder %s2567_s12, %s2006_s14  ;;  %p2010_p8 = scmp.lt.u32.totalorder %s2006_s14, %s2567_s12 }
 0x573   :  { %p2012_p9 = pnand %p2010_p8, %p2007_p7 }
 0x575   :  { %2015 = shalt.err (!%p2012_p9)
}
 0x576   :  { %1382 = dma.vmem_to_hbm [thread:$0]  %s1380_s3, 32, %s2567_s12, [#allocation3]  }
 0x577   :  { %2016 = dma.done.wait [#allocation3], 32  }
 0x578   :  { %2017 = vsyncadd [#allocation3], 4294967264 }
 0x579   :  { %2018 = dma.done.wait [#allocation5], 64  }
 0x57a   :  { %2019 = vsyncadd [#allocation5], 4294967232 }
 0x57b   :  { %1412 = vsyncpa [#allocation3], 1 }
 0x57c   :  { %1413 = vsyncpa [#allocation5], 1 }

</bundles_post_ra>
